<compile_context>
chip_gen: v5e
topology: v5e:2x2
jax: 0.10.0
libtpu: 0.0.40
codegen_flags: <defaults>
</compile_context>

<pallas_src>
import jax
import jax.numpy as jnp
from jax import lax
from jax.experimental import pallas as pl
from jax.experimental.pallas import tpu as pltpu


# VMEM budgets chosen to be safe on every generation (v5e/v6e: 128 MiB
# physical, v7x: 64 MiB physical / 32 MiB scoped default).
_FUSED_VMEM_BUDGET = 40 * 1024 * 1024    # ~2x(in)+2x(out) slabs + f32 working copy
_FUSED_VMEM_LIMIT = 48 * 1024 * 1024
_TWO_PASS_BLOCK_BYTES = 4 * 1024 * 1024  # per-block budget for the tiled fallback
_TWO_PASS_VMEM_LIMIT = 32 * 1024 * 1024


# ---------------------------------------------------------------------------
# Fused kernel: pool + k-tap channel conv + sigmoid + scale, one batch per
# grid step.  w_ref lives in SMEM; mp_ref is a zero-padded (C+2*pad, 1) f32
# scratch column used to express Conv1d's zero padding as shifted reads.
# ---------------------------------------------------------------------------
def _make_fused_kernel(c, hw, k):
    pad = (k - 1) // 2
    inv_hw = 1.0 / float(hw)

    def fused_kernel(w_ref, x_ref, o_ref, mp_ref):
        x = x_ref[0]                                                  # (C, HW)
        means = jnp.sum(x.astype(jnp.float32), axis=-1,
                        keepdims=True) * inv_hw                       # (C, 1)

        # Zero-padded means column -> k shifted reads == Conv1d(1,1,k,pad).
        mp_ref[...] = jnp.zeros_like(mp_ref)
        mp_ref[pl.ds(pad, c), :] = means
        conv = w_ref[0] * mp_ref[pl.ds(0, c), :]
        for j in range(1, k):
            conv = conv + w_ref[j] * mp_ref[pl.ds(j, c), :]

        att = jax.nn.sigmoid(conv).astype(x.dtype)                    # (C, 1)
        o_ref[0] = (x * att).astype(o_ref.dtype)

    return fused_kernel


def _fused_forward(x3, wf, n, c, hw, k, itemsize):
    pad = (k - 1) // 2
    cost = pl.CostEstimate(
        flops=int(2 * n * c * hw + n * c * k),
        transcendentals=int(n * c),
        bytes_accessed=int(2 * n * c * hw * itemsize + k * 4),
    )
    return pl.pallas_call(
        _make_fused_kernel(c, hw, k),
        out_shape=jax.ShapeDtypeStruct((n, c, hw), x3.dtype),
        grid=(n,),
        in_specs=[
            pl.BlockSpec(memory_space=pltpu.MemorySpace.SMEM),        # w (k,)
            pl.BlockSpec((1, c, hw), lambda b: (b, 0, 0)),
        ],
        out_specs=pl.BlockSpec((1, c, hw), lambda b: (b, 0, 0)),
        scratch_shapes=[pltpu.VMEM((c + 2 * pad, 1), jnp.float32)],
        compiler_params=pltpu.CompilerParams(
            dimension_semantics=("parallel",),
            vmem_limit_bytes=_FUSED_VMEM_LIMIT),
        cost_estimate=cost,
    )(wf, x3)


# ---------------------------------------------------------------------------
# Two-pass fallback (per-batch slab too large for VMEM).
# ---------------------------------------------------------------------------
def _choose_spatial_tile(hw, c, itemsize, max_block_bytes=_TWO_PASS_BLOCK_BYTES):
    """Largest multiple-of-128 tile within the byte budget (cdiv grid +
    masked partial trailing tile handles any H*W)."""
    if hw <= 128:
        return hw
    max_lanes = max(128, ((max_block_bytes // max(1, c * itemsize)) // 128) * 128)
    aligned_hw = (hw // 128) * 128
    return int(min(max_lanes, aligned_hw))


def _make_pool_kernel(hw, t_hw, n_t):
    inv_hw = 1.0 / float(hw)
    n_chunks = t_hw // 128 if t_hw % 128 == 0 else 0
    has_partial = (n_t * t_hw != hw)

    def pool_kernel(x_ref, mean_ref, acc_ref):
        t = pl.program_id(1)

        @pl.when(t == 0)
        def _init():
            acc_ref[...] = jnp.zeros_like(acc_ref)

        xf = x_ref[0].astype(jnp.float32)                             # (C, t_hw)
        if has_partial:  # mask lanes past H*W on the trailing tile
            col = t * t_hw + lax.broadcasted_iota(jnp.int32, xf.shape, 1)
            xf = jnp.where(col < hw, xf, 0.0)

        if n_chunks >= 1:
            # Lane-dense accumulation: add 128-lane vreg columns (pure VPU),
            # keep the single cross-lane reduce for the finalize step.
            part = xf[:, 0:128]
            for m in range(1, n_chunks):
                part = part + xf[:, m * 128:(m + 1) * 128]
            acc_ref[...] += part                                      # (C, 128)
        else:
            acc_ref[...] += jnp.sum(xf, axis=-1, keepdims=True)       # (C, 1)

        @pl.when(t == n_t - 1)
        def _finalize():
            mean_ref[0] = jnp.sum(acc_ref[...], axis=-1,
                                  keepdims=True) * inv_hw             # (C, 1)

    return pool_kernel


def _scale_kernel(x_ref, att_ref, o_ref):
    o_ref[...] = (x_ref[...] * att_ref[...]).astype(o_ref.dtype)


def _conv1d_sigmoid_host(means_nc, w, out_dtype):
    """k-tap Conv1d (zero pad, no bias) + sigmoid on the (N, C) means."""
    c = means_nc.shape[1]
    k = w.shape[0]
    pad = (k - 1) // 2
    mp = jnp.pad(means_nc, ((0, 0), (pad, pad)))
    conv = jnp.zeros_like(means_nc)
    for j in range(k):
        conv = conv + w[j] * mp[:, j:j + c]
    return jax.nn.sigmoid(conv).astype(out_dtype)


def _two_pass_forward(x3, wf, n, c, hw, k, itemsize):
    t_hw = _choose_spatial_tile(hw, c, itemsize)
    n_t = int(pl.cdiv(hw, t_hw))
    acc_lanes = 128 if t_hw % 128 == 0 else 1

    pool_cost = pl.CostEstimate(
        flops=int(n * c * hw),
        transcendentals=0,
        bytes_accessed=int(n * c * hw * itemsize + n * c * 4),
    )
    means = pl.pallas_call(
        _make_pool_kernel(hw, t_hw, n_t),
        out_shape=jax.ShapeDtypeStruct((n, c, 1), jnp.float32),
        grid=(n, n_t),
        in_specs=[pl.BlockSpec((1, c, t_hw), lambda b, t: (b, 0, t))],
        out_specs=pl.BlockSpec((1, c, 1), lambda b, t: (b, 0, 0)),
        scratch_shapes=[pltpu.VMEM((c, acc_lanes), jnp.float32)],
        compiler_params=pltpu.CompilerParams(
            dimension_semantics=("parallel", "arbitrary"),
            vmem_limit_bytes=_TWO_PASS_VMEM_LIMIT),
        cost_estimate=pool_cost,
    )(x3)

    # Tiny O(N*C*k) conv + sigmoid on the means — plain XLA between calls.
    att = _conv1d_sigmoid_host(means[:, :, 0], wf, x3.dtype)[:, :, None]

    scale_cost = pl.CostEstimate(
        flops=int(n * c * hw),
        transcendentals=0,
        bytes_accessed=int(2 * n * c * hw * itemsize + n * c * itemsize),
    )
    out3 = pl.pallas_call(
        _scale_kernel,
        out_shape=jax.ShapeDtypeStruct((n, c, hw), x3.dtype),
        grid=(n, n_t),
        in_specs=[
            pl.BlockSpec((1, c, t_hw), lambda b, t: (b, 0, t)),
            pl.BlockSpec((1, c, 1), lambda b, t: (b, 0, 0)),
        ],
        out_specs=pl.BlockSpec((1, c, t_hw), lambda b, t: (b, 0, t)),
        compiler_params=pltpu.CompilerParams(
            dimension_semantics=("parallel", "parallel"),
            vmem_limit_bytes=_TWO_PASS_VMEM_LIMIT),
        cost_estimate=scale_cost,
    )(x3, att)
    return out3


# ---------------------------------------------------------------------------
# Forward pass (NCHW in / NCHW out, matching the PyTorch module).
#   x : (N, C, H, W)
#   w : (k,)  -- Conv1d weight[0, 0, :]
# ---------------------------------------------------------------------------
def eca_forward(x, w, *, force_two_pass=False):
    n, c, h, wd = x.shape
    hw = h * wd
    k = w.shape[0]
    itemsize = jnp.dtype(x.dtype).itemsize
    x3 = x.reshape(n, c, hw)                      # view, no relayout
    wf = w.astype(jnp.float32)

    # Fused path needs ~2x(in)+2x(out) double-buffered slabs plus an f32
    # working copy resident in VMEM.
    slab_bytes = c * hw * itemsize
    fused_bytes = 4 * slab_bytes + 4 * c * hw
    if (not force_two_pass) and fused_bytes <= _FUSED_VMEM_BUDGET:
        out3 = _fused_forward(x3, wf, n, c, hw, k, itemsize)
    else:
        out3 = _two_pass_forward(x3, wf, n, c, hw, k, itemsize)
    return out3.reshape(n, c, h, wd)


# ---------------------------------------------------------------------------
# Pure-JAX reference (mirrors torch semantics) for validation.
# ---------------------------------------------------------------------------
def reference_forward(x, w):
    n, c, h, wd = x.shape
    k = w.shape[0]
    pad = (k - 1) // 2
    means = jnp.mean(x.astype(jnp.float32), axis=(2, 3))    # (N, C)
    mp = jnp.pad(means, ((0, 0), (pad, pad)))
    conv = jnp.zeros_like(means)
    for j in range(k):
        conv = conv + w[j] * mp[:, j:j + c]
    att = jax.nn.sigmoid(conv)
    return (x * att[:, :, None, None]).astype(x.dtype)


# ---------------------------------------------------------------------------
if __name__ == "__main__":
    N, C, H, W, K = 2, 32, 16, 16, 3
    key = jax.random.PRNGKey(0)
    kx, kw = jax.random.split(key)

    x = jax.random.normal(kx, (N, C, H, W), dtype=jnp.float32)
    w = jax.random.normal(kw, (K,), dtype=jnp.float32) * 0.5   # Conv1d taps

    # Fused single-pass path (typical ECA shapes).
    out = jax.block_until_ready(jax.jit(eca_forward)(x, w))
    ref = reference_forward(x, w)
    assert out.shape == (N, C, H, W), out.shape
    err = float(jnp.max(jnp.abs(out - ref)))
    assert jnp.allclose(out, ref, atol=1e-5, rtol=1e-5), err

    # Two-pass fallback path, including a masked partial trailing spatial
    # tile (H*W = 18*18 = 324 is not a multiple of 128).
    x2 = jax.random.normal(kx, (N, C, 18, 18), dtype=jnp.float32)
    out2 = jax.block_until_ready(
        jax.jit(lambda a, b: eca_forward(a, b, force_two_pass=True))(x2, w))
    ref2 = reference_forward(x2, w)
    err2 = float(jnp.max(jnp.abs(out2 - ref2)))
    assert jnp.allclose(out2, ref2, atol=1e-5, rtol=1e-5), err2

    print("KERNEL_OK")
</pallas_src>

<mosaic_0001>
module attributes {stable_mosaic.version = 11 : i64} {
  func.func @fused_kernel(%arg0: i32, %arg1: memref<3xf32, #tpu.memory_space<smem>>, %arg2: memref<1x32x256xf32, #tpu.memory_space<vmem>>, %arg3: memref<1x32x256xf32, #tpu.memory_space<vmem>>, %arg4: memref<34x1xf32, #tpu.memory_space<vmem>>) attributes {dimension_semantics = [#tpu.dimension_semantics<parallel>], iteration_bounds = array<i64: 2>, scalar_prefetch = 0 : i64, scratch_operands = 1 : i64, tpu.core_type = #tpu.core_type<tc>, window_params = [{transform_indices = @transform_0, window_bounds = array<i64: 3>}, {transform_indices = @transform_1, window_bounds = array<i64: 1, 32, 256>}, {transform_indices = @transform_2, window_bounds = array<i64: 1, 32, 256>}]} {
    %c0 = arith.constant 0 : index
    %c0_0 = arith.constant 0 : index
    %c0_1 = arith.constant 0 : index
    %0 = vector.load %arg2[%c0, %c0_0, %c0_1] : memref<1x32x256xf32, #tpu.memory_space<vmem>>, vector<1x32x256xf32>
    %1 = vector.shape_cast %0 : vector<1x32x256xf32> to vector<32x256xf32>
    %cst = arith.constant dense<0.000000e+00> : vector<32xf32>
    %2 = vector.multi_reduction <add>, %1, %cst [1] : vector<32x256xf32> to vector<32xf32>
    %3 = vector.shape_cast %2 : vector<32xf32> to vector<32x1xf32>
    %cst_2 = arith.constant 3.906250e-03 : f32
    %4 = vector.broadcast %cst_2 : f32 to vector<32x1xf32>
    %5 = arith.mulf %3, %4 : vector<32x1xf32>
    %cst_3 = arith.constant 0.000000e+00 : f32
    %6 = vector.broadcast %cst_3 : f32 to vector<34x1xf32>
    %c0_4 = arith.constant 0 : index
    %c0_5 = arith.constant 0 : index
    %7 = vector.load %arg4[%c0_4, %c0_5] : memref<34x1xf32, #tpu.memory_space<vmem>>, vector<34x1xf32>
    tpu.vector_store %arg4[%c0_4, %c0_5], %6 {strides = array<i32>} : memref<34x1xf32, #tpu.memory_space<vmem>>, vector<34x1xf32>,
    %c1 = arith.constant 1 : index
    %c0_6 = arith.constant 0 : index
    %8 = vector.load %arg4[%c1, %c0_6] : memref<34x1xf32, #tpu.memory_space<vmem>>, vector<32x1xf32>
    tpu.vector_store %arg4[%c1, %c0_6], %5 {strides = array<i32>} : memref<34x1xf32, #tpu.memory_space<vmem>>, vector<32x1xf32>,
    %c0_7 = arith.constant 0 : index
    %9 = memref.load %arg1[%c0_7] : memref<3xf32, #tpu.memory_space<smem>>
    %c0_8 = arith.constant 0 : index
    %c0_9 = arith.constant 0 : index
    %10 = vector.load %arg4[%c0_8, %c0_9] : memref<34x1xf32, #tpu.memory_space<vmem>>, vector<32x1xf32>
    %11 = vector.broadcast %9 : f32 to vector<32x1xf32>
    %12 = arith.mulf %11, %10 : vector<32x1xf32>
    %c1_10 = arith.constant 1 : index
    %13 = memref.load %arg1[%c1_10] : memref<3xf32, #tpu.memory_space<smem>>
    %c1_11 = arith.constant 1 : index
    %c0_12 = arith.constant 0 : index
    %14 = vector.load %arg4[%c1_11, %c0_12] : memref<34x1xf32, #tpu.memory_space<vmem>>, vector<32x1xf32>
    %15 = vector.broadcast %13 : f32 to vector<32x1xf32>
    %16 = arith.mulf %15, %14 : vector<32x1xf32>
    %17 = arith.addf %12, %16 : vector<32x1xf32>
    %c2 = arith.constant 2 : index
    %18 = memref.load %arg1[%c2] : memref<3xf32, #tpu.memory_space<smem>>
    %c2_13 = arith.constant 2 : index
    %c0_14 = arith.constant 0 : index
    %19 = vector.load %arg4[%c2_13, %c0_14] : memref<34x1xf32, #tpu.memory_space<vmem>>, vector<32x1xf32>
    %20 = vector.broadcast %18 : f32 to vector<32x1xf32>
    %21 = arith.mulf %20, %19 : vector<32x1xf32>
    %22 = arith.addf %17, %21 : vector<32x1xf32>
    %23 = arith.negf %22 : vector<32x1xf32>
    %24 = math.exp %23 : vector<32x1xf32>
    %cst_15 = arith.constant 1.000000e+00 : f32
    %25 = vector.broadcast %cst_15 : f32 to vector<32x1xf32>
    %26 = arith.addf %25, %24 : vector<32x1xf32>
    %27 = arith.divf %25, %26 : vector<32x1xf32>
    %28 = vector.broadcast %27 : vector<32x1xf32> to vector<32x256xf32>
    %29 = arith.mulf %1, %28 : vector<32x256xf32>
    %c0_16 = arith.constant 0 : index
    %c0_17 = arith.constant 0 : index
    %c0_18 = arith.constant 0 : index
    %30 = vector.load %arg3[%c0_16, %c0_17, %c0_18] : memref<1x32x256xf32, #tpu.memory_space<vmem>>, vector<1x32x256xf32>
    %31 = vector.shape_cast %30 : vector<1x32x256xf32> to vector<32x256xf32>
    %32 = vector.shape_cast %29 : vector<32x256xf32> to vector<1x32x256xf32>
    tpu.vector_store %arg3[%c0_16, %c0_17, %c0_18], %32 {strides = array<i32>} : memref<1x32x256xf32, #tpu.memory_space<vmem>>, vector<1x32x256xf32>,
    return
  }
  func.func @transform_0(%arg0: i32) -> i32 {
    %c0_i32 = arith.constant 0 : i32
    %c0_i32_0 = arith.constant 0 : i32
    return %c0_i32 : i32
  }
  func.func @transform_1(%arg0: i32) -> (i32, i32, i32) {
    %c0_i32 = arith.constant 0 : i32
    %c0_i32_0 = arith.constant 0 : i32
    %c0_i32_1 = arith.constant 0 : i32
    return %arg0, %c0_i32, %c0_i32_0 : i32, i32, i32
  }
  func.func @transform_2(%arg0: i32) -> (i32, i32, i32) {
    %c0_i32 = arith.constant 0 : i32
    %c0_i32_0 = arith.constant 0 : i32
    %c0_i32_1 = arith.constant 0 : i32
    return %arg0, %c0_i32, %c0_i32_0 : i32, i32, i32
  }
}

</mosaic_0001>

<bundles_post_ra>
// kernel: eca_forward.1
= control target key start
LH: loop header
LB: loop body
LE: loop exit
PB: predicated region body
PF: predicated region fallthrough
CT: control target
= control target key end

     0   :  { %7 = vsyncpa [#allocation4], 0  ;;  %s516_s9 = smov 0   ;;  %s585_s0 = inlined_call_operand.vmem [shape: f32[3], index: 0, kind: input, shape index: {}]   ;;  %s586_s1 = inlined_call_operand.vmem [shape: f32[2,32,256], index: 1, kind: input, shape index: {}]   ;;  %s587_s2 = inlined_call_operand.vmem [shape: f32[2,32,256], index: 2, kind: output, shape index: {}]  }
   0x1 LB: > { %s410_s10 = sadd.s32 4294967295, %s496_s9   ;;  %p412_p0 = scmp.ge.s32.totalorder %s496_s9, 1  ;;  %s496_s9 = sphi %s516_s9, %s13_s9  }
   0x2   : > { %p91_p1 = scmp.lt.s32.totalorder %s496_s9, 3  ;;  %s103_s13 = sshll.u32 %s585_s0, 4  ;;  %s104_s13 = int_to_ptr.vmem [resolvable:$true] %s103_s13 }
   0x3   : > { %p439_p3 = scmp.eq.s32.totalorder %s410_s10, 0  ;;  %s498_s14 = smov [#allocation3]  }
   0x4   : > { %p92_p2 = pnand %p412_p0, %p91_p1 }
   0x6   : > { %p435_p4 = pneg %p92_p2  ;;  %124 = sbr.rel (%p92_p2) target bundleno = 312 (0x138), region = 28 }
   0x8   : > { %p436_p5 = pnand %p439_p3, %p435_p4 }
   0xa   : > { %438 = dma.vmem_to_smem (!%p436_p5), %s104_s13, 16, %s498_s14, [#allocation4]  }
   0xb   : > { %491 = dma.done.wait (%p439_p3), [#allocation4], 16  }
   0xc   : > { %493 = vsyncadd (%p439_p3), [#allocation4], 4294967280 }
   0xd   : > { %131 = sfence }
   0xe   : > { %p148_p6 = scmp.lt.s32.totalorder %s410_s10, 1  ;;  %vm182_vm0 = vcmask 7168   ;;  %v499_v0 = vmov 0.0   ;;  %vm187_vm1 = vcmask 1024   ;;  %v500_v13 = vmov 0   ;;  %s193_s19 = sld [smem:[#allocation3]] }
   0xf   : > { %185 = vst.msk [vmem:[#allocation2 + $0x10] sm:$0xff] %vm182_vm0, %v499_v0  ;;  %452 = vset.pattern.permute.xlu2 %v500_v13  ;;  %454 = vset.pattern.permute.xlu1 %v500_v13  ;;  %s421_s20 = sld [smem:[#allocation3 + $0x1]] }
  0x10   : > { %s589_s10 = smov (!%p148_p6, %s410_s10), 1  ;;  %186 = vst.msk [vmem:[#allocation2 + $0x18] sm:$0xff] %vm182_vm0, %v499_v0  ;;  %453 = vset.pattern.permute.xlu0 %v500_v13  ;;  %s422_s21 = sld [smem:[#allocation3 + $0x2]] }
  0x11   : > { %183 = vst.msk [vmem:[#allocation2] sm:$0xff] %vm182_vm0, %v499_v0  ;;  %s429_s15 = sshll.u32 %s589_s10, 6 }
  0x12   : > { %184 = vst.msk [vmem:[#allocation2 + $0x8] sm:$0xff] %vm182_vm0, %v499_v0  ;;  %s152_s18 = scalar_lea.vmem %s586_s1, %s429_s15  ;;  %s157_s24 = scalar_lea.vmem %s587_s2, %s429_s15 }
  0x13   : > { %v539_v1 = vld [vmem:[%s152_s18 + $0x20] sm:$0xff]  ;;  %v541_v2 = vld [vmem:[%s152_s18 + $0x28] sm:$0xff]  ;;  %v551_v7 = vld [vmem:[%s152_s18 + $0x30] sm:$0xff]  ;;  %188 = vst.msk [vmem:[#allocation2 + $0x20] sm:$0x3] %vm187_vm1, %v499_v0 }
  0x14   : > { %v543_v3 = vld [vmem:[%s152_s18] sm:$0xff]  ;;  %v172_v4 = vadd.f32 %v541_v2, %v539_v1  ;;  %v547_v5 = vld [vmem:[%s152_s18 + $0x8] sm:$0xff]  ;;  %v553_v8 = vld [vmem:[%s152_s18 + $0x38] sm:$0xff]  ;;  %v198_v23 = vstv %s193_s19 }
  0x15   : > { %v166_v6 = vadd.f32 %v547_v5, %v543_v3  ;;  %v555_v9 = vld [vmem:[%s152_s18 + $0x10] sm:$0xff]  ;;  %v557_v10 = vld [vmem:[%s152_s18 + $0x18] sm:$0xff]  ;;  %v175_v11 = vadd.f32 %v553_v8, %v551_v7  ;;  %v208_v25 = vstv %s421_s20 }
  0x16   : > { %173 = vadd.xlane.f32.xlu1 %v172_v4  ;;  %v169_v12 = vadd.f32 %v557_v10, %v555_v9  ;;  %v222_v28 = vstv %s422_s21 }
  0x17   : > { %167 = vadd.xlane.f32.xlu0 %v166_v6 }
  0x1e   : > { %176 = vadd.xlane.f32.xlu1 %v175_v11 }
  0x1f   : > { %170 = vadd.xlane.f32.xlu0 %v169_v12 }
  0x89   : > { %v174_v14 = vpop.xlane.xlu1 %173 }
  0x8a   : > { %v180_v15 = vmul.f32 0.00390625, %v174_v14  ;;  %v168_v16 = vpop.xlane.xlu0 %167 }
  0x8b   : > { %v178_v17 = vmul.f32 0.00390625, %v168_v16 }
  0x8c   : > { %191 = vst.msk [vmem:[#allocation2 + $0x11] sm:$0xff] %vm182_vm0, %v180_v15 }
  0x8d   : > { %189 = vst.msk [vmem:[#allocation2 + $0x1] sm:$0xff] %vm182_vm0, %v178_v17 }
  0x91   : > { %v177_v18 = vpop.xlane.xlu1 %176 }
  0x92   : > { %v181_v19 = vmul.f32 0.00390625, %v177_v18  ;;  %v171_v20 = vpop.xlane.xlu0 %170 }
  0x93   : > { %v179_v21 = vmul.f32 0.00390625, %v171_v20  ;;  %v206_v29 = vld [vmem:[#allocation2 + $0x11] sm:$0xff] }
  0x94   : > { %192 = vst.msk [vmem:[#allocation2 + $0x19] sm:$0xff] %vm182_vm0, %v181_v19  ;;  %v194_v22 = vld [vmem:[#allocation2] sm:$0xff]  ;;  %v211_v41 = vmul.f32 %v208_v25, %v206_v29 }
  0x95   : > { %190 = vst.msk [vmem:[#allocation2 + $0x9] sm:$0xff] %vm182_vm0, %v179_v21  ;;  %v204_v24 = vld [vmem:[#allocation2 + $0x1] sm:$0xff]  ;;  %v199_v26 = vmul.f32 %v198_v23, %v194_v22 }
  0x96   : > { %v209_v27 = vmul.f32 %v208_v25, %v204_v24 }
  0x98   : > { %v213_v38 = vadd.f32 %v209_v27, %v199_v26 }
  0x9b   : > { %v197_v30 = vld [vmem:[#allocation2 + $0x18] sm:$0xff] }
  0x9c   : > { %v207_v31 = vld [vmem:[#allocation2 + $0x19] sm:$0xff]  ;;  %v218_v33 = vld [vmem:[#allocation2 + $0x2] sm:$0xff]  ;;  %v202_v34 = vmul.f32 %v198_v23, %v197_v30  ;;  %v196_v36 = vld [vmem:[#allocation2 + $0x10] sm:$0xff] }
  0x9d   : > { %v221_v32 = vld [vmem:[#allocation2 + $0x1a] sm:$0xff]  ;;  %v212_v35 = vmul.f32 %v208_v25, %v207_v31  ;;  %v220_v37 = vld [vmem:[#allocation2 + $0x12] sm:$0xff]  ;;  %v223_v39 = vmul.f32 %v222_v28, %v218_v33  ;;  %v201_v40 = vmul.f32 %v198_v23, %v196_v36  ;;  %v195_v42 = vld [vmem:[#allocation2 + $0x8] sm:$0xff] }
  0x9e   : > { %v205_v43 = vld [vmem:[#allocation2 + $0x9] sm:$0xff]  ;;  %v226_v46 = vmul.f32 %v222_v28, %v221_v32  ;;  %v200_v47 = vmul.f32 %v198_v23, %v195_v42  ;;  %v225_v51 = vmul.f32 %v222_v28, %v220_v37 }
  0x9f   : > { %v219_v44 = vld [vmem:[#allocation2 + $0xa] sm:$0xff]  ;;  %v216_v45 = vadd.f32 %v212_v35, %v202_v34  ;;  %v210_v48 = vmul.f32 %v208_v25, %v205_v43  ;;  %v227_v49 = vadd.f32 %v223_v39, %v213_v38  ;;  %v215_v50 = vadd.f32 %v211_v41, %v201_v40 }
  0xa0   : > { %v224_v54 = vmul.f32 %v222_v28, %v219_v44 }
  0xa1   : > { %v230_v52 = vadd.f32 %v226_v46, %v216_v45  ;;  %v214_v53 = vadd.f32 %v210_v48, %v200_v47  ;;  %v423_v55 = vmul.f32 -1.442695, %v227_v49  ;;  %v229_v56 = vadd.f32 %v225_v51, %v215_v50 }
  0xa3   : > { %v426_v57 = vmul.f32 -1.442695, %v230_v52  ;;  %v228_v58 = vadd.f32 %v224_v54, %v214_v53  ;;  %455 = vpow2.f32 %v423_v55  ;;  %v425_v59 = vmul.f32 -1.442695, %v229_v56 }
  0xa5   : > { %457 = vpow2.f32 %v426_v57  ;;  %v424_v60 = vmul.f32 -1.442695, %v228_v58 }
  0xa6   : > { %459 = vpow2.f32 %v425_v59 }
  0xa7   : > { %461 = vpow2.f32 %v424_v60 }
  0xa9   : > { %v456_v61 = vpop.eup %455 }
  0xaa   : > { %v243_v63 = vadd.f32 1.0, %v456_v61 }
  0xab   : > { %v458_v62 = vpop.eup %457 }
  0xac   : > { %v460_v0 = vpop.eup %459  ;;  %v246_v4 = vadd.f32 1.0, %v458_v62  ;;  %463 = vrcp.f32 %v243_v63  ;;  %v256_v18 = vand.u32 2147483647, %v243_v63  ;;  %v258_v19 = vand.u32 2147483648, %v243_v63 }
  0xad   : > { %v462_v6 = vpop.eup %461  ;;  %v245_v11 = vadd.f32 1.0, %v460_v0  ;;  %vm252_vm2 = vweird.f32 %v243_v63 }
  0xae   : > { %465 = vrcp.f32 %v246_v4  ;;  %v244_v12 = vadd.f32 1.0, %v462_v6  ;;  %v303_v22 = vand.u32 2147483648, %v246_v4  ;;  %vm297_vm4 = vweird.f32 %v246_v4 }
  0xaf   : > { %467 = vrcp.f32 %v245_v11  ;;  %v301_v27 = vand.u32 2147483647, %v246_v4  ;;  %vm257_vm6 = vcmp.eq.f32.partialorder %v256_v18, 8.507059e+37  ;;  %v259_v30 = vor.u32 1.1754944e-38, %v258_v19 }
  0xb0   : > { %469 = vrcp.f32 %v244_v12  ;;  %v304_v33 = vor.u32 1.1754944e-38, %v303_v22  ;;  %v288_v34 = vand.u32 2147483648, %v245_v11  ;;  %v286_v38 = vand.u32 2147483647, %v245_v11 }
  0xb1   : > { %vm302_vm10 = vcmp.eq.f32.partialorder %v301_v27, 8.507059e+37  ;;  %vm282_vm11 = vweird.f32 %v245_v11  ;;  %v273_v46 = vand.u32 2147483648, %v244_v12  ;;  %vm267_vm15 = vweird.f32 %v244_v12 }
  0xb2   : > { %v464_v13 = vpop.eup %463  ;;  %v289_v44 = vor.u32 1.1754944e-38, %v288_v34  ;;  %vm287_vm14 = vcmp.eq.f32.partialorder %v286_v38, 8.507059e+37  ;;  %v271_v48 = vand.u32 2147483647, %v244_v12 }
  0xb3   : > { %v248_v15 = vmul.f32 %v464_v13, %v243_v63  ;;  %vm253_vm3 = vweird.f32 %v464_v13  ;;  %v274_v51 = vor.u32 1.1754944e-38, %v273_v46 }
  0xb4   : > { %v466_v14 = vpop.eup %465  ;;  %vm254_vm7 = vmor %vm252_vm2, %vm253_vm3  ;;  %vm272_vm1 = vcmp.eq.f32.partialorder %v271_v48, 8.507059e+37 }
  0xb5   : > { %v293_v16 = vmul.f32 %v466_v14, %v246_v4  ;;  %v249_v17 = vsub.f32 1.0, %v248_v15  ;;  %v468_v20 = vpop.eup %467  ;;  %vm298_vm5 = vweird.f32 %v466_v14 }
  0xb6   : > { %v470_v23 = vpop.eup %469  ;;  %v278_v25 = vmul.f32 %v468_v20, %v245_v11  ;;  %vm299_vm8 = vmor %vm297_vm4, %vm298_vm5  ;;  %vm283_vm9 = vweird.f32 %v468_v20 }
  0xb7   : > { %v294_v21 = vsub.f32 1.0, %v293_v16  ;;  %v250_v24 = vmul.f32 %v464_v13, %v249_v17  ;;  %v263_v28 = vmul.f32 %v470_v23, %v244_v12  ;;  %vm268_vm12 = vweird.f32 %v470_v23  ;;  %vm284_vm13 = vmor %vm282_vm11, %vm283_vm9 }
  0xb8   : > { %v279_v31 = vsub.f32 1.0, %v278_v25  ;;  %vm269_vm0 = vmor %vm267_vm15, %vm268_vm12 }
  0xb9   : > { %v295_v26 = vmul.f32 %v466_v14, %v294_v21  ;;  %v251_v29 = vadd.f32 %v464_v13, %v250_v24  ;;  %v264_v35 = vsub.f32 1.0, %v263_v28 }
  0xba   : > { %v280_v37 = vmul.f32 %v468_v20, %v279_v31 }
  0xbb   : > { %v296_v32 = vadd.f32 %v466_v14, %v295_v26  ;;  %v255_v36 = vsel %vm254_vm7, %v464_v13, %v251_v29  ;;  %v265_v41 = vmul.f32 %v470_v23, %v264_v35 }
  0xbc   : > { %v260_v39 = vsel %vm257_vm6, %v259_v30, %v255_v36  ;;  %v281_v43 = vadd.f32 %v468_v20, %v280_v37 }
  0xbd   : > { %v300_v40 = vsel %vm299_vm8, %v466_v14, %v296_v32  ;;  %309 = vperm.xlu2 %452, %v260_v39   ;;  %v266_v45 = vadd.f32 %v470_v23, %v265_v41 }
  0xbe   : > { %v305_v42 = vsel %vm302_vm10, %v304_v33, %v300_v40  ;;  %v285_v47 = vsel %vm284_vm13, %v468_v20, %v281_v43 }
  0xbf   : > { %324 = vperm.xlu1 %454, %v305_v42   ;;  %v290_v49 = vsel %vm287_vm14, %v289_v44, %v285_v47  ;;  %v270_v50 = vsel %vm269_vm0, %v470_v23, %v266_v45 }
  0xc0   : > { %319 = vperm.xlu0 %453, %v290_v49   ;;  %v275_v52 = vsel %vm272_vm1, %v274_v51, %v270_v50 }
  0xc5   : > { %314 = vperm.xlu2 %452, %v275_v52  }
 0x117   : > { %v310_v53 = vpop.permute.xlu2 %309 }
 0x118   : > { %v327_v54 = vmul.f32 %v310_v53, %v543_v3  ;;  %v328_v55 = vmul.f32 %v310_v53, %v547_v5 }
 0x11a   : > { %335 = vst [vmem:[%s157_s24] sm:$0xff] %v327_v54 }
 0x11b   : > { %336 = vst [vmem:[%s157_s24 + $0x8] sm:$0xff] %v328_v55 }
 0x11f   : > { %v315_v56 = vpop.permute.xlu2 %314 }
 0x120   : > { %v329_v57 = vmul.f32 %v315_v56, %v555_v9  ;;  %v330_v58 = vmul.f32 %v315_v56, %v557_v10 }
 0x122   : > { %337 = vst [vmem:[%s157_s24 + $0x10] sm:$0xff] %v329_v57 }
 0x123   : > { %338 = vst [vmem:[%s157_s24 + $0x18] sm:$0xff] %v330_v58 }
 0x131   : > { %v325_v59 = vpop.permute.xlu1 %324 }
 0x132   : > { %v333_v60 = vmul.f32 %v325_v59, %v551_v7  ;;  %v334_v61 = vmul.f32 %v325_v59, %v553_v8  ;;  %v320_v62 = vpop.permute.xlu0 %319 }
 0x133   : > { %v331_v3 = vmul.f32 %v320_v62, %v539_v1  ;;  %v332_v5 = vmul.f32 %v320_v62, %v541_v2 }
 0x134   : > { %341 = vst [vmem:[%s157_s24 + $0x30] sm:$0xff] %v333_v60 }
 0x135   : > { %342 = vst [vmem:[%s157_s24 + $0x38] sm:$0xff] %v334_v61 }
 0x136   : > { %339 = vst [vmem:[%s157_s24 + $0x20] sm:$0xff] %v331_v3 }
 0x137   : > { %340 = vst [vmem:[%s157_s24 + $0x28] sm:$0xff] %v332_v5 }
 0x138 PF: > { %s13_s9 = sadd.s32 1, %s496_s9  }
 0x139   : > { %p10_p7 = scmp.ge.s32.totalorder %s13_s9, 4  }
 0x13b   :  { %12 = sbr.rel (!%p10_p7) target bundleno = 1 (0x1), region = 63 }
 0x140   :  { %364 = vsyncpa [#allocation4], 1 }
 0x141   :  { %366 = vsyncpa [#allocation4 + $0x1], 1 }

</bundles_post_ra>
